<compile_context>
chip_gen: v7x
topology: tpu7x:2x2x1
jax: 0.10.0
libtpu: 0.0.40
codegen_flags: <defaults>
</compile_context>

<pallas_src>
import functools

import jax
import jax.numpy as jnp
from jax.experimental import pallas as pl
from jax.experimental.pallas import tpu as pltpu


def _supcon_infonce2_kernel(tab_ref, ts_ref, labc_ref, labr_ref,
                            out_ref,
                            ts_norm, colsum_u, loss2_num, mask_csum, wcol,
                            rowterm,
                            *, inv_temp, tm, n, n_tiles, mm_dtype):
    i = pl.program_id(0)   # row-tile index

    @pl.when(i == 0)
    def _init():
        colsum_u[...] = jnp.zeros_like(colsum_u)
        loss2_num[...] = jnp.zeros_like(loss2_num)
        mask_csum[...] = jnp.zeros_like(mask_csum)
        wcol[...] = jnp.zeros_like(wcol)
        rowterm[...] = jnp.zeros_like(rowterm)
        # Normalize (and down-cast) ts exactly once; cache in VMEM scratch.
        ts_f = ts_ref[...].astype(jnp.float32)                       # (N, E)
        ssq = jnp.sum(ts_f * ts_f, axis=1, keepdims=True)
        ts_norm[...] = (ts_f * jax.lax.rsqrt(jnp.maximum(ssq, 1e-24))
                        ).astype(mm_dtype)

    # (2*tm, E) tile: rows [:tm] = tab_unique tile, rows [tm:] = tab_shared.
    tab = tab_ref[...].astype(jnp.float32)
    ssq = jnp.sum(tab * tab, axis=1, keepdims=True)
    # F.normalize(p=2, dim=1) == x * rsqrt(max(||x||^2, eps^2)); fold 1/T in.
    scale = jax.lax.rsqrt(jnp.maximum(ssq, 1e-24)) * inv_temp        # (2tm, 1)
    lhs = (tab * scale).astype(mm_dtype)                             # (2tm, E)

    dn = (((1,), (1,)), ((), ()))   # contract E: lhs @ ts_norm.T (no transpose)
    sims = jax.lax.dot_general(lhs, ts_norm[...], dimension_numbers=dn,
                               preferred_element_type=jnp.float32)   # (2tm, N)
    sim_u = sims[:tm]                                                # (tm, N)
    sim_s = sims[tm:]                                                # (tm, N)

    mask = (labc_ref[...] == labr_ref[...]).astype(jnp.float32)      # (tm, N)

    exp_u = jnp.exp(sim_u)                                           # (tm, N)
    d_row = jnp.log(jnp.sum(exp_u, axis=1, keepdims=True))           # (tm, 1)

    sm = sim_s * mask                                                # reused
    mrs = jnp.sum(mask, axis=1, keepdims=True)                       # (tm, 1)
    inv_mrs = 1.0 / mrs                                              # >=1 always
    srs = jnp.sum(sm, axis=1, keepdims=True)                         # (tm, 1)

    # Column-direction accumulators carried across row tiles.
    colsum_u[...] += jnp.sum(exp_u, axis=0, keepdims=True)
    mask_csum[...] += jnp.sum(mask, axis=0, keepdims=True)
    loss2_num[...] += jnp.sum(sm - d_row * mask, axis=0, keepdims=True)
    wcol[...] += jnp.sum(mask * inv_mrs, axis=0, keepdims=True)
    rowterm[...] += jnp.sum(srs * inv_mrs, keepdims=True)            # (1, 1)

    @pl.when(i == n_tiles - 1)
    def _finalize():
        d_col = jnp.log(colsum_u[...])                               # (1, N)
        # sum_i loss1[i] = sum_j d_col[j] * wcol[j] - rowterm
        loss1_sum = jnp.sum(d_col * wcol[...], keepdims=True) - rowterm[...]
        # sum_j loss2[j] = sum_j -loss2_num[j] / mask_csum[j]
        loss2_sum = jnp.sum(-loss2_num[...] / mask_csum[...], keepdims=True)
        out_ref[...] = (loss1_sum + loss2_sum) * (0.5 / n)


def _pick_tm(n):
    # Largest convenient row tile; kept <=128 so the (2*tm, N) temporaries and
    # the ts cache stay VMEM-friendly on v7x (64 MiB) as well as v5e/v6e.
    for t in (128, 64, 32, 16, 8):
        if n % t == 0:
            return t
    return n  # single tile (block == full array is always legal)


def supcon_infonce_loss2(tab_unique, tab_shared, ts, labels,
                         temperature: float = 0.1,
                         tm: int | None = None,
                         use_bf16_matmul: bool = True):
    """Pallas implementation of SupConInfoNCELoss2.forward. Returns scalar f32."""
    n, e = tab_unique.shape
    assert tab_shared.shape == (n, e) and ts.shape == (n, e)

    if tm is None:
        tm = _pick_tm(n)
    if n % tm != 0 or (tm != n and tm % 8 != 0):
        tm = n  # fall back to a single row tile
    n_tiles = n // tm

    # Pad the embedding (lane / MXU contraction) axis to a multiple of 128.
    # Zero columns change neither the L2 norms nor the dot products.
    e_pad = e if e % 128 == 0 else ((e + 127) // 128) * 128
    if e_pad != e:
        pad = ((0, 0), (0, e_pad - e))
        tab_unique = jnp.pad(tab_unique, pad)
        tab_shared = jnp.pad(tab_shared, pad)
        ts = jnp.pad(ts, pad)

    # Stack unique/shared per row tile -> one (2*tm, E) LHS block per grid step
    # so each step issues a single fused MXU matmul against the cached ts.
    tab_cat = jnp.concatenate(
        [tab_unique.reshape(n_tiles, tm, e_pad),
         tab_shared.reshape(n_tiles, tm, e_pad)], axis=1
    ).reshape(n_tiles * 2 * tm, e_pad)

    lab_col = labels.reshape(n, 1).astype(jnp.int32)
    lab_row = labels.reshape(1, n).astype(jnp.int32)

    mm_dtype = jnp.bfloat16 if use_bf16_matmul else jnp.float32

    kernel = functools.partial(
        _supcon_infonce2_kernel,
        inv_temp=float(1.0 / temperature), tm=tm, n=n, n_tiles=n_tiles,
        mm_dtype=mm_dtype)

    # Per-tile working-set estimate (generous) -> scoped VMEM budget,
    # capped at 56 MiB to leave headroom under v7x's 64 MiB physical VMEM.
    inp_bytes = tab_cat.dtype.itemsize
    mm_bytes = 2 if use_bf16_matmul else 4
    n_lane = max(n, 128)
    est_vmem = (
        2 * (2 * tm) * e_pad * inp_bytes    # tab_cat tile, double-buffered
        + 2 * n * e_pad * inp_bytes         # raw ts block (+ pipeline buffer)
        + n * e_pad * mm_bytes              # normalized ts cache
        + 5 * 8 * n_lane * 4                # (1,N)/(1,1) scratch, sublane-padded
        + 10 * tm * n_lane * 4              # (tm,N)/(2tm,N) f32 temporaries
        + (2 << 20)                         # headroom
    )
    vmem_limit = int(min(max(est_vmem, 32 * 1024 * 1024), 56 * 1024 * 1024))

    out = pl.pallas_call(
        kernel,
        out_shape=jax.ShapeDtypeStruct((1, 1), jnp.float32),
        grid_spec=pltpu.PrefetchScalarGridSpec(
            num_scalar_prefetch=0,
            grid=(n_tiles,),
            in_specs=[
                pl.BlockSpec((2 * tm, e_pad), lambda i: (i, 0)),  # stacked tiles
                pl.BlockSpec((n, e_pad), lambda i: (0, 0)),       # ts (resident)
                pl.BlockSpec((tm, 1), lambda i: (i, 0)),          # labels (col)
                pl.BlockSpec((1, n), lambda i: (0, 0)),           # labels (row)
            ],
            out_specs=pl.BlockSpec((1, 1), lambda i: (0, 0)),
            scratch_shapes=[
                pltpu.VMEM((n, e_pad), mm_dtype),   # normalized ts cache
                pltpu.VMEM((1, n), jnp.float32),    # colsum exp(sim_unique)
                pltpu.VMEM((1, n), jnp.float32),    # loss2 numerator
                pltpu.VMEM((1, n), jnp.float32),    # mask column sums
                pltpu.VMEM((1, n), jnp.float32),    # wcol = sum_i mask/mrs
                pltpu.VMEM((1, 1), jnp.float32),    # rowterm = sum_i srs/mrs
            ],
        ),
        compiler_params=pltpu.CompilerParams(
            dimension_semantics=("arbitrary",),
            vmem_limit_bytes=vmem_limit,
        ),
    )(tab_cat, ts, lab_col, lab_row)
    return out[0, 0]


def _reference_loss(tab_unique, tab_shared, ts, labels, temperature=0.1):
    """Pure-JAX (f32) mirror of the PyTorch forward, for verification."""
    mask = (labels[:, None] == labels[None, :]).astype(jnp.float32)

    def l2n(x):
        return x / jnp.maximum(
            jnp.sqrt(jnp.sum(x * x, axis=1, keepdims=True)), 1e-12)

    tu, tsh, t = l2n(tab_unique), l2n(tab_shared), l2n(ts)
    sim_s = (tsh @ t.T) / temperature
    sim_u = (tu @ t.T) / temperature
    exp_u = jnp.exp(sim_u)
    c1 = sim_s - jnp.log(exp_u.sum(axis=0, keepdims=True))
    loss1 = -(c1 * mask).sum(axis=1) / mask.sum(axis=1)
    c2 = sim_s - jnp.log(exp_u.sum(axis=1, keepdims=True))
    loss2 = -(c2 * mask).sum(axis=0) / mask.sum(axis=0)
    return (loss1.mean() + loss2.mean()) / 2.0


if __name__ == "__main__":
    N, E = 16, 32
    key = jax.random.PRNGKey(0)
    k1, k2, k3, k4 = jax.random.split(key, 4)
    tab_unique = jax.random.normal(k1, (N, E), dtype=jnp.float32)
    tab_shared = jax.random.normal(k2, (N, E), dtype=jnp.float32)
    ts = jax.random.normal(k3, (N, E), dtype=jnp.float32)
    labels = jax.random.randint(k4, (N,), 0, 4, dtype=jnp.int32)

    temperature = 0.1

    # tm=8 -> grid of 2 row tiles: exercises the cross-tile accumulation path.
    loss = supcon_infonce_loss2(tab_unique, tab_shared, ts, labels,
                                temperature=temperature, tm=8)
    loss = jax.block_until_ready(loss)

    ref = _reference_loss(tab_unique, tab_shared, ts, labels, temperature)
    # Tolerance loosened vs the f32 reference because the similarity matmuls
    # use bf16 MXU inputs (f32 accumulation) with 1/T = 10 scaling.
    assert jnp.allclose(loss, ref, rtol=2e-2, atol=5e-2), (loss, ref)

    print("KERNEL_OK")
</pallas_src>

<mosaic_0001>
module attributes {stable_mosaic.version = 11 : i64} {
  func.func @_supcon_infonce2_kernel(%arg0: i32, %arg1: memref<16x128xf32, #tpu.memory_space<vmem>>, %arg2: memref<16x128xf32, #tpu.memory_space<vmem>>, %arg3: memref<8x1xi32, #tpu.memory_space<vmem>>, %arg4: memref<1x16xi32, #tpu.memory_space<vmem>>, %arg5: memref<1x1xf32, #tpu.memory_space<vmem>>, %arg6: memref<16x128xbf16, #tpu.memory_space<vmem>>, %arg7: memref<1x16xf32, #tpu.memory_space<vmem>>, %arg8: memref<1x16xf32, #tpu.memory_space<vmem>>, %arg9: memref<1x16xf32, #tpu.memory_space<vmem>>, %arg10: memref<1x16xf32, #tpu.memory_space<vmem>>, %arg11: memref<1x1xf32, #tpu.memory_space<vmem>>) attributes {dimension_semantics = [#tpu.dimension_semantics<arbitrary>], iteration_bounds = array<i64: 2>, scalar_prefetch = 0 : i64, scratch_operands = 6 : i64, tpu.core_type = #tpu.core_type<tc>, window_params = [{transform_indices = @transform_0, window_bounds = array<i64: 16, 128>}, {pipeline_mode = #tpu.pipeline_mode<synchronous>, transform_indices = @transform_1, window_bounds = array<i64: 16, 128>}, {transform_indices = @transform_2, window_bounds = array<i64: 8, 1>}, {pipeline_mode = #tpu.pipeline_mode<synchronous>, transform_indices = @transform_3, window_bounds = array<i64: 1, 16>}, {pipeline_mode = #tpu.pipeline_mode<synchronous>, transform_indices = @transform_4, window_bounds = array<i64: 1, 1>}]} {
    %c0_i32 = arith.constant 0 : i32
    %0 = arith.cmpi eq, %arg0, %c0_i32 : i32
    %1 = arith.extui %0 : i1 to i32
    %c0_i32_0 = arith.constant 0 : i32
    %2 = arith.cmpi ne, %1, %c0_i32_0 : i32
    scf.if %2 {
      %cst_41 = arith.constant 0.000000e+00 : f32
      %74 = vector.broadcast %cst_41 : f32 to vector<1x16xf32>
      %c0_42 = arith.constant 0 : index
      %c0_43 = arith.constant 0 : index
      %75 = vector.load %arg7[%c0_42, %c0_43] : memref<1x16xf32, #tpu.memory_space<vmem>>, vector<1x16xf32>
      tpu.vector_store %arg7[%c0_42, %c0_43], %74 {strides = array<i32>} : memref<1x16xf32, #tpu.memory_space<vmem>>, vector<1x16xf32>,
      %cst_44 = arith.constant 0.000000e+00 : f32
      %76 = vector.broadcast %cst_44 : f32 to vector<1x16xf32>
      %c0_45 = arith.constant 0 : index
      %c0_46 = arith.constant 0 : index
      %77 = vector.load %arg8[%c0_45, %c0_46] : memref<1x16xf32, #tpu.memory_space<vmem>>, vector<1x16xf32>
      tpu.vector_store %arg8[%c0_45, %c0_46], %76 {strides = array<i32>} : memref<1x16xf32, #tpu.memory_space<vmem>>, vector<1x16xf32>,
      %cst_47 = arith.constant 0.000000e+00 : f32
      %78 = vector.broadcast %cst_47 : f32 to vector<1x16xf32>
      %c0_48 = arith.constant 0 : index
      %c0_49 = arith.constant 0 : index
      %79 = vector.load %arg9[%c0_48, %c0_49] : memref<1x16xf32, #tpu.memory_space<vmem>>, vector<1x16xf32>
      tpu.vector_store %arg9[%c0_48, %c0_49], %78 {strides = array<i32>} : memref<1x16xf32, #tpu.memory_space<vmem>>, vector<1x16xf32>,
      %cst_50 = arith.constant 0.000000e+00 : f32
      %80 = vector.broadcast %cst_50 : f32 to vector<1x16xf32>
      %c0_51 = arith.constant 0 : index
      %c0_52 = arith.constant 0 : index
      %81 = vector.load %arg10[%c0_51, %c0_52] : memref<1x16xf32, #tpu.memory_space<vmem>>, vector<1x16xf32>
      tpu.vector_store %arg10[%c0_51, %c0_52], %80 {strides = array<i32>} : memref<1x16xf32, #tpu.memory_space<vmem>>, vector<1x16xf32>,
      %cst_53 = arith.constant 0.000000e+00 : f32
      %82 = vector.broadcast %cst_53 : f32 to vector<1x1xf32>
      %c0_54 = arith.constant 0 : index
      %c0_55 = arith.constant 0 : index
      %83 = vector.load %arg11[%c0_54, %c0_55] : memref<1x1xf32, #tpu.memory_space<vmem>>, vector<1x1xf32>
      tpu.vector_store %arg11[%c0_54, %c0_55], %82 {strides = array<i32>} : memref<1x1xf32, #tpu.memory_space<vmem>>, vector<1x1xf32>,
      %c0_56 = arith.constant 0 : index
      %c0_57 = arith.constant 0 : index
      %84 = vector.load %arg2[%c0_56, %c0_57] : memref<16x128xf32, #tpu.memory_space<vmem>>, vector<16x128xf32>
      %85 = arith.mulf %84, %84 : vector<16x128xf32>
      %cst_58 = arith.constant dense<0.000000e+00> : vector<16xf32>
      %86 = vector.multi_reduction <add>, %85, %cst_58 [1] : vector<16x128xf32> to vector<16xf32>
      %87 = vector.shape_cast %86 : vector<16xf32> to vector<16x1xf32>
      %cst_59 = arith.constant 1.000000e-24 : f32
      %88 = vector.broadcast %cst_59 : f32 to vector<16x1xf32>
      %89 = arith.maximumf %87, %88 : vector<16x1xf32>
      %90 = math.rsqrt %89 : vector<16x1xf32>
      %91 = vector.broadcast %90 : vector<16x1xf32> to vector<16x128xf32>
      %92 = arith.mulf %84, %91 : vector<16x128xf32>
      %93 = arith.truncf %92 : vector<16x128xf32> to vector<16x128xbf16>
      %c0_60 = arith.constant 0 : index
      %c0_61 = arith.constant 0 : index
      %94 = vector.load %arg6[%c0_60, %c0_61] : memref<16x128xbf16, #tpu.memory_space<vmem>>, vector<16x128xbf16>
      tpu.vector_store %arg6[%c0_60, %c0_61], %93 {strides = array<i32>} : memref<16x128xbf16, #tpu.memory_space<vmem>>, vector<16x128xbf16>,
    } else {
    }
    %c0 = arith.constant 0 : index
    %c0_1 = arith.constant 0 : index
    %3 = vector.load %arg1[%c0, %c0_1] : memref<16x128xf32, #tpu.memory_space<vmem>>, vector<16x128xf32>
    %4 = arith.mulf %3, %3 : vector<16x128xf32>
    %cst = arith.constant dense<0.000000e+00> : vector<16xf32>
    %5 = vector.multi_reduction <add>, %4, %cst [1] : vector<16x128xf32> to vector<16xf32>
    %6 = vector.shape_cast %5 : vector<16xf32> to vector<16x1xf32>
    %cst_2 = arith.constant 1.000000e-24 : f32
    %7 = vector.broadcast %cst_2 : f32 to vector<16x1xf32>
    %8 = arith.maximumf %6, %7 : vector<16x1xf32>
    %9 = math.rsqrt %8 : vector<16x1xf32>
    %cst_3 = arith.constant 1.000000e+01 : f32
    %10 = vector.broadcast %cst_3 : f32 to vector<16x1xf32>
    %11 = arith.mulf %9, %10 : vector<16x1xf32>
    %12 = vector.broadcast %11 : vector<16x1xf32> to vector<16x128xf32>
    %13 = arith.mulf %3, %12 : vector<16x128xf32>
    %14 = arith.truncf %13 : vector<16x128xf32> to vector<16x128xbf16>
    %c0_4 = arith.constant 0 : index
    %c0_5 = arith.constant 0 : index
    %15 = vector.load %arg6[%c0_4, %c0_5] : memref<16x128xbf16, #tpu.memory_space<vmem>>, vector<16x128xbf16>
    %cst_6 = arith.constant dense<0.000000e+00> : vector<16x16xf32>
    %16 = tpu.matmul %14, %15, %cst_6 {dimension_numbers = #tpu.dot_dimension_numbers<[1], [1], [0], [0], [0, 0, 1, 0], [], []>} : vector<16x128xbf16>, vector<16x128xbf16>, vector<16x16xf32> -> vector<16x16xf32>
    %17 = vector.extract_strided_slice %16 {offsets = [0, 0], sizes = [8, 16], strides = [1, 1]} : vector<16x16xf32> to vector<8x16xf32>
    %18 = vector.extract_strided_slice %16 {offsets = [8, 0], sizes = [8, 16], strides = [1, 1]} : vector<16x16xf32> to vector<8x16xf32>
    %c0_7 = arith.constant 0 : index
    %c0_8 = arith.constant 0 : index
    %19 = vector.load %arg3[%c0_7, %c0_8] : memref<8x1xi32, #tpu.memory_space<vmem>>, vector<8x1xi32>
    %c0_9 = arith.constant 0 : index
    %c0_10 = arith.constant 0 : index
    %20 = vector.load %arg4[%c0_9, %c0_10] : memref<1x16xi32, #tpu.memory_space<vmem>>, vector<1x16xi32>
    %21 = vector.broadcast %19 : vector<8x1xi32> to vector<8x16xi32>
    %22 = vector.broadcast %20 : vector<1x16xi32> to vector<8x16xi32>
    %23 = arith.cmpi eq, %21, %22 : vector<8x16xi32>
    %24 = arith.extui %23 : vector<8x16xi1> to vector<8x16xi32>
    %25 = arith.sitofp %24 : vector<8x16xi32> to vector<8x16xf32>
    %26 = math.exp %17 : vector<8x16xf32>
    %cst_11 = arith.constant dense<0.000000e+00> : vector<8xf32>
    %27 = vector.multi_reduction <add>, %26, %cst_11 [1] : vector<8x16xf32> to vector<8xf32>
    %28 = vector.shape_cast %27 : vector<8xf32> to vector<8x1xf32>
    %29 = math.log %28 : vector<8x1xf32>
    %30 = arith.mulf %18, %25 : vector<8x16xf32>
    %cst_12 = arith.constant dense<0.000000e+00> : vector<8xf32>
    %31 = vector.multi_reduction <add>, %25, %cst_12 [1] : vector<8x16xf32> to vector<8xf32>
    %32 = vector.shape_cast %31 : vector<8xf32> to vector<8x1xf32>
    %cst_13 = arith.constant 1.000000e+00 : f32
    %33 = vector.broadcast %cst_13 : f32 to vector<8x1xf32>
    %34 = arith.divf %33, %32 : vector<8x1xf32>
    %cst_14 = arith.constant dense<0.000000e+00> : vector<8xf32>
    %35 = vector.multi_reduction <add>, %30, %cst_14 [1] : vector<8x16xf32> to vector<8xf32>
    %36 = vector.shape_cast %35 : vector<8xf32> to vector<8x1xf32>
    %c0_15 = arith.constant 0 : index
    %c0_16 = arith.constant 0 : index
    %37 = vector.load %arg7[%c0_15, %c0_16] : memref<1x16xf32, #tpu.memory_space<vmem>>, vector<1x16xf32>
    %cst_17 = arith.constant dense<0.000000e+00> : vector<16xf32>
    %38 = vector.multi_reduction <add>, %26, %cst_17 [0] : vector<8x16xf32> to vector<16xf32>
    %39 = vector.shape_cast %38 : vector<16xf32> to vector<1x16xf32>
    %40 = arith.addf %37, %39 : vector<1x16xf32>
    %c0_18 = arith.constant 0 : index
    %c0_19 = arith.constant 0 : index
    %41 = vector.load %arg7[%c0_18, %c0_19] : memref<1x16xf32, #tpu.memory_space<vmem>>, vector<1x16xf32>
    tpu.vector_store %arg7[%c0_18, %c0_19], %40 {strides = array<i32>} : memref<1x16xf32, #tpu.memory_space<vmem>>, vector<1x16xf32>,
    %c0_20 = arith.constant 0 : index
    %c0_21 = arith.constant 0 : index
    %42 = vector.load %arg9[%c0_20, %c0_21] : memref<1x16xf32, #tpu.memory_space<vmem>>, vector<1x16xf32>
    %cst_22 = arith.constant dense<0.000000e+00> : vector<16xf32>
    %43 = vector.multi_reduction <add>, %25, %cst_22 [0] : vector<8x16xf32> to vector<16xf32>
    %44 = vector.shape_cast %43 : vector<16xf32> to vector<1x16xf32>
    %45 = arith.addf %42, %44 : vector<1x16xf32>
    %c0_23 = arith.constant 0 : index
    %c0_24 = arith.constant 0 : index
    %46 = vector.load %arg9[%c0_23, %c0_24] : memref<1x16xf32, #tpu.memory_space<vmem>>, vector<1x16xf32>
    tpu.vector_store %arg9[%c0_23, %c0_24], %45 {strides = array<i32>} : memref<1x16xf32, #tpu.memory_space<vmem>>, vector<1x16xf32>,
    %c0_25 = arith.constant 0 : index
    %c0_26 = arith.constant 0 : index
    %47 = vector.load %arg8[%c0_25, %c0_26] : memref<1x16xf32, #tpu.memory_space<vmem>>, vector<1x16xf32>
    %48 = vector.broadcast %29 : vector<8x1xf32> to vector<8x16xf32>
    %49 = arith.mulf %48, %25 : vector<8x16xf32>
    %50 = arith.subf %30, %49 : vector<8x16xf32>
    %cst_27 = arith.constant dense<0.000000e+00> : vector<16xf32>
    %51 = vector.multi_reduction <add>, %50, %cst_27 [0] : vector<8x16xf32> to vector<16xf32>
    %52 = vector.shape_cast %51 : vector<16xf32> to vector<1x16xf32>
    %53 = arith.addf %47, %52 : vector<1x16xf32>
    %c0_28 = arith.constant 0 : index
    %c0_29 = arith.constant 0 : index
    %54 = vector.load %arg8[%c0_28, %c0_29] : memref<1x16xf32, #tpu.memory_space<vmem>>, vector<1x16xf32>
    tpu.vector_store %arg8[%c0_28, %c0_29], %53 {strides = array<i32>} : memref<1x16xf32, #tpu.memory_space<vmem>>, vector<1x16xf32>,
    %c0_30 = arith.constant 0 : index
    %c0_31 = arith.constant 0 : index
    %55 = vector.load %arg10[%c0_30, %c0_31] : memref<1x16xf32, #tpu.memory_space<vmem>>, vector<1x16xf32>
    %56 = vector.broadcast %34 : vector<8x1xf32> to vector<8x16xf32>
    %57 = arith.mulf %25, %56 : vector<8x16xf32>
    %cst_32 = arith.constant dense<0.000000e+00> : vector<16xf32>
    %58 = vector.multi_reduction <add>, %57, %cst_32 [0] : vector<8x16xf32> to vector<16xf32>
    %59 = vector.shape_cast %58 : vector<16xf32> to vector<1x16xf32>
    %60 = arith.addf %55, %59 : vector<1x16xf32>
    %c0_33 = arith.constant 0 : index
    %c0_34 = arith.constant 0 : index
    %61 = vector.load %arg10[%c0_33, %c0_34] : memref<1x16xf32, #tpu.memory_space<vmem>>, vector<1x16xf32>
    tpu.vector_store %arg10[%c0_33, %c0_34], %60 {strides = array<i32>} : memref<1x16xf32, #tpu.memory_space<vmem>>, vector<1x16xf32>,
    %c0_35 = arith.constant 0 : index
    %c0_36 = arith.constant 0 : index
    %62 = vector.load %arg11[%c0_35, %c0_36] : memref<1x1xf32, #tpu.memory_space<vmem>>, vector<1x1xf32>
    %63 = arith.mulf %36, %34 : vector<8x1xf32>
    %64 = vector.shape_cast %63 : vector<8x1xf32> to vector<1x8x1xf32>
    %cst_37 = arith.constant dense<0.000000e+00> : vector<1xf32>
    %65 = vector.multi_reduction <add>, %64, %cst_37 [1, 2] : vector<1x8x1xf32> to vector<1xf32>
    %66 = vector.shape_cast %65 : vector<1xf32> to vector<1x1x1xf32>
    %67 = vector.extract %66[0, 0, 0] : f32 from vector<1x1x1xf32>
    %68 = vector.broadcast %67 : f32 to vector<1x1xf32>
    %69 = arith.addf %62, %68 : vector<1x1xf32>
    %c0_38 = arith.constant 0 : index
    %c0_39 = arith.constant 0 : index
    %70 = vector.load %arg11[%c0_38, %c0_39] : memref<1x1xf32, #tpu.memory_space<vmem>>, vector<1x1xf32>
    tpu.vector_store %arg11[%c0_38, %c0_39], %69 {strides = array<i32>} : memref<1x1xf32, #tpu.memory_space<vmem>>, vector<1x1xf32>,
    %c1_i32 = arith.constant 1 : i32
    %71 = arith.cmpi eq, %arg0, %c1_i32 : i32
    %72 = arith.extui %71 : i1 to i32
    %c0_i32_40 = arith.constant 0 : i32
    %73 = arith.cmpi ne, %72, %c0_i32_40 : i32
    scf.if %73 {
      %c0_41 = arith.constant 0 : index
      %c0_42 = arith.constant 0 : index
      %74 = vector.load %arg7[%c0_41, %c0_42] : memref<1x16xf32, #tpu.memory_space<vmem>>, vector<1x16xf32>
      %75 = math.log %74 : vector<1x16xf32>
      %c0_43 = arith.constant 0 : index
      %c0_44 = arith.constant 0 : index
      %76 = vector.load %arg10[%c0_43, %c0_44] : memref<1x16xf32, #tpu.memory_space<vmem>>, vector<1x16xf32>
      %77 = arith.mulf %75, %76 : vector<1x16xf32>
      %78 = vector.shape_cast %77 : vector<1x16xf32> to vector<1x1x16xf32>
      %cst_45 = arith.constant dense<0.000000e+00> : vector<1xf32>
      %79 = vector.multi_reduction <add>, %78, %cst_45 [1, 2] : vector<1x1x16xf32> to vector<1xf32>
      %80 = vector.shape_cast %79 : vector<1xf32> to vector<1x1x1xf32>
      %81 = vector.extract %80[0, 0, 0] : f32 from vector<1x1x1xf32>
      %82 = vector.broadcast %81 : f32 to vector<1x1xf32>
      %c0_46 = arith.constant 0 : index
      %c0_47 = arith.constant 0 : index
      %83 = vector.load %arg11[%c0_46, %c0_47] : memref<1x1xf32, #tpu.memory_space<vmem>>, vector<1x1xf32>
      %84 = arith.subf %82, %83 : vector<1x1xf32>
      %c0_48 = arith.constant 0 : index
      %c0_49 = arith.constant 0 : index
      %85 = vector.load %arg8[%c0_48, %c0_49] : memref<1x16xf32, #tpu.memory_space<vmem>>, vector<1x16xf32>
      %cst_50 = arith.constant 0.000000e+00 : f32
      %86 = vector.broadcast %cst_50 : f32 to vector<1x16xf32>
      %87 = arith.subf %86, %85 : vector<1x16xf32>
      %c0_51 = arith.constant 0 : index
      %c0_52 = arith.constant 0 : index
      %88 = vector.load %arg9[%c0_51, %c0_52] : memref<1x16xf32, #tpu.memory_space<vmem>>, vector<1x16xf32>
      %89 = arith.divf %87, %88 : vector<1x16xf32>
      %90 = vector.shape_cast %89 : vector<1x16xf32> to vector<1x1x16xf32>
      %cst_53 = arith.constant dense<0.000000e+00> : vector<1xf32>
      %91 = vector.multi_reduction <add>, %90, %cst_53 [1, 2] : vector<1x1x16xf32> to vector<1xf32>
      %92 = vector.shape_cast %91 : vector<1xf32> to vector<1x1x1xf32>
      %93 = vector.extract %92[0, 0, 0] : f32 from vector<1x1x1xf32>
      %94 = vector.broadcast %93 : f32 to vector<1x1xf32>
      %95 = arith.addf %84, %94 : vector<1x1xf32>
      %cst_54 = arith.constant 3.125000e-02 : f32
      %96 = vector.broadcast %cst_54 : f32 to vector<1x1xf32>
      %97 = arith.mulf %95, %96 : vector<1x1xf32>
      %c0_55 = arith.constant 0 : index
      %c0_56 = arith.constant 0 : index
      %98 = vector.load %arg5[%c0_55, %c0_56] : memref<1x1xf32, #tpu.memory_space<vmem>>, vector<1x1xf32>
      tpu.vector_store %arg5[%c0_55, %c0_56], %97 {strides = array<i32>} : memref<1x1xf32, #tpu.memory_space<vmem>>, vector<1x1xf32>,
    } else {
    }
    return
  }
  func.func @transform_0(%arg0: i32) -> (i32, i32) {
    %c0_i32 = arith.constant 0 : i32
    %c0_i32_0 = arith.constant 0 : i32
    return %arg0, %c0_i32 : i32, i32
  }
  func.func @transform_1(%arg0: i32) -> (i32, i32) {
    %c0_i32 = arith.constant 0 : i32
    %c0_i32_0 = arith.constant 0 : i32
    %c0_i32_1 = arith.constant 0 : i32
    return %c0_i32, %c0_i32_0 : i32, i32
  }
  func.func @transform_2(%arg0: i32) -> (i32, i32) {
    %c0_i32 = arith.constant 0 : i32
    %c0_i32_0 = arith.constant 0 : i32
    return %arg0, %c0_i32 : i32, i32
  }
  func.func @transform_3(%arg0: i32) -> (i32, i32) {
    %c0_i32 = arith.constant 0 : i32
    %c0_i32_0 = arith.constant 0 : i32
    %c0_i32_1 = arith.constant 0 : i32
    return %c0_i32, %c0_i32_0 : i32, i32
  }
  func.func @transform_4(%arg0: i32) -> (i32, i32) {
    %c0_i32 = arith.constant 0 : i32
    %c0_i32_0 = arith.constant 0 : i32
    %c0_i32_1 = arith.constant 0 : i32
    return %c0_i32, %c0_i32_0 : i32, i32
  }
}

</mosaic_0001>

<bundles_post_ra>
// kernel: tpu_custom_call.1
= control target key start
LH: loop header
LB: loop body
LE: loop exit
PB: predicated region body
PF: predicated region fallthrough
CT: control target
= control target key end

     0   :  { %9 = vsyncpa [#allocation9], 0  ;;  %s911_s0 = inlined_call_operand.hbm [shape: f32[32,128], index: 0, kind: input, shape index: {}]   ;;  %s912_s1 = inlined_call_operand.vmem [shape: f32[16,128], index: 1, kind: input, shape index: {}]   ;;  %s913_s2 = inlined_call_operand.vmem [shape: s32[16,1], index: 2, kind: input, shape index: {}]   ;;  %s914_s3 = inlined_call_operand.vmem [shape: s32[1,16], index: 3, kind: input, shape index: {}]   ;;  %s915_s4 = inlined_call_operand.hbm [shape: f32[1,1], index: 4, kind: output, shape index: {}]  }
   0x1   :  { %11 = vsyncpa [#allocation9 + $0x1], 0 }
   0x2   :  { %12 = vsyncpa [#allocation10], 0  ;;  %s740_s15 = smov 0   ;;  %s742_s16 = smov 0  }
   0x3   :  { %s744_s17 = smov 0   ;;  %s746_s18 = smov 0  }
   0x4 LB: > { %s759_s19 = sadd.s32 4294967295, %s705_s18   ;;  %s762_s20 = sadd.s32 1, %s705_s18   ;;  %s705_s18 = sphi %s746_s18, %s922_s18   ;;  %s701_s17 = sphi %s744_s17, %s921_s17   ;;  %s697_s16 = sphi %s742_s16, %s920_s16   ;;  %s693_s15 = sphi %s740_s15, %s919_s15  }
   0x5   : > { %s22_s21 = ssub.s32 %s705_s18, %s762_s20  ;;  %s25_s22 = sadd.s32 1, %s701_s17 }
   0x6   : > { %p23_p0 = scmp.eq.s32.totalorder %s22_s21, 0  ;;  %p32_p1 = scmp.ne.s32.totalorder %s701_s17, %s697_s16 }
   0x7   : > { %p33_p2 = scmp.eq.s32.totalorder %s705_s18, 0  ;;  %p38_p3 = scmp.ne.s32.totalorder %s697_s16, %s693_s15 }
   0x8   : > { %s772_s23 = scalar_select %p23_p0, %s701_s17, %s25_s22  }
   0x9   : > { %p34_p4 = por %p33_p2, %p32_p1  ;;  %p39_p5 = scmp.eq.s32.totalorder %s759_s19, 0 }
   0xa   : > { %p549_p6 = scmp.lt.s32.totalorder %s705_s18, 2  ;;  %s157_s25 = sand.u32 1, %s701_s17  }
   0xb   : > { %p776_p7 = por %p39_p5, %p38_p3  ;;  %s510_s26 = sshll.u32 %s157_s25, 4 }
   0xc   : > { %s524_s27 = sshll.u32 %s705_s18, 8  ;;  %s161_s5 = scalar_lea.vmem [#allocation8], %s510_s26 }
   0xd   : > { %s785_s30 = scalar_lea.hbm %s911_s0, %s524_s27  ;;  %s168_s6 = sshll.u32 %s161_s5, 4  ;;  %s787_s6 = int_to_ptr.vmem [resolvable:$true] %s168_s6 }
   0xe   : > { %p789_p8 = pnand %p549_p6, %p34_p4  ;;  %s794_s8 = scalar_lea.sflag [#allocation9], %s157_s25 }
   0xf   : > { %s611_s9 = scalar_lea.hbm %s785_s30, 256  ;;  %s616_s12 = scalar_lea.hbm %s911_s0, 512 }
  0x10   : > { %p612_p10 = scmp.ne.s32.totalorder %s785_s30, %s611_s9  ;;  %p613_p11 = pneg %p789_p8 }
  0x11   : > { %p617_p0 = scmp.lt.u32.totalorder %s785_s30, %s911_s0  ;;  %p618_p1 = scmp.lt.u32.totalorder %s616_s12, %s611_s9 }
  0x12   : > { %p614_p12 = pnand %p613_p11, %p612_p10  ;;  %p620_p3 = scmp.lt.u32.totalorder %s611_s9, %s785_s30 }
  0x13   : > { %p619_p2 = por %p618_p1, %p617_p0 }
  0x14   : > { %p615_p13 = pneg %p614_p12 }
  0x15   : > { %p621_p4 = por %p620_p3, %p619_p2 }
  0x17   : > { %p622_p5 = pnand %p621_p4, %p615_p13 }
  0x19   : > { %625 = shalt.err (!%p622_p5)
}
  0x1a   : > { %s626_s15 = scalar_lea.vmem %s787_s6, 256  ;;  %s707_s21 = smov [#allocation8]  }
  0x1b   : > { %p627_p6 = scmp.ne.s32.totalorder %s787_s6, %s626_s15  ;;  %s631_s22 = sshll.u32 %s707_s21, 4  ;;  %s632_s22 = int_to_ptr.vmem [resolvable:$false] %s631_s22 }
  0x1c   : > { %s633_s25 = scalar_lea.vmem %s632_s22, 512  ;;  %p634_p9 = scmp.lt.s32.totalorder %s787_s6, %s632_s22 }
  0x1d   : > { %p629_p10 = pnand %p627_p6, %p613_p11  ;;  %p635_p0 = scmp.lt.s32.totalorder %s633_s25, %s626_s15 }
  0x1f   : > { %p630_p12 = pneg %p629_p10  ;;  %p636_p1 = por %p635_p0, %p634_p9 }
  0x21   : > { %p637_p2 = pnand %p636_p1, %p630_p12 }
  0x23   : > { %640 = shalt.err (!%p637_p2)
}
  0x24   : > { %s708_s26 = smov 128   ;;  %s709_s27 = smov 8  }
  0x25   : > { %548 = dma.hbm_to_vmem [thread:$0]  (!%p789_p8), %s785_s30, 256, %s787_s6, %s794_s8, %s708_s26, %s708_s26, %s709_s27  }
  0x26   : > { %p183_p11 = scmp.lt.s32.totalorder %s705_s18, 3  ;;  %p918_p13 = scmp.ge.s32.totalorder %s705_s18, 1 }
  0x28   : > { %p184_p3 = pnand %p918_p13, %p183_p11 }
  0x29   : > { %s189_s28 = sand.u32 (!%p184_p3), 1, %s697_s16  }
  0x2a   : > { %187 = sbr.rel (%p184_p3) target bundleno = 1175 (0x497), region = 36  ;;  %s826_s29 = sshll.u32 (!%p184_p3), %s189_s28, 4 }
  0x2b   : > { %s190_s5 = scalar_lea.sflag (!%p184_p3), [#allocation9], %s189_s28  ;;  %s193_s9 = scalar_lea.vmem (!%p184_p3), [#allocation8], %s826_s29 }
  0x31   : > { %684 = dma.done.wait (%p776_p7), %s190_s5, 256  }
  0x32   : > { %686 = vsyncadd (%p776_p7), %s190_s5, 4294967040  ;;  %p218_p8 = scmp.lt.s32.totalorder %s759_s19, 1  ;;  %p516_p9 = scmp.ne.s32.totalorder %s759_s19, 0 }
  0x33   : > { %v234_v0 = vld [vmem:[%s912_s1] sm:$0xff] (!%p516_p9)  ;;  %v235_v1 = vld [vmem:[%s912_s1 + $0x8] sm:$0xff] (!%p516_p9)  ;;  %vm227_vm0 = vcmask (!%p516_p9), 122880   ;;  %vm232_vm1 = vcmask (!%p516_p9), 0   ;;  %v710_v4 = vmov (!%p516_p9), 0.0  }
  0x34   : > { %s219_s30 = scalar_select %p218_p8, %s759_s19, 1 }
  0x35   : > { %226 = sbr.rel (%p516_p9) target bundleno = 219 (0xdb), region = 44  ;;  %v236_v2 = vmul.f32 (!%p516_p9), %v234_v0, %v234_v0  ;;  %v237_v3 = vmul.f32 (!%p516_p9), %v235_v1, %v235_v1  ;;  %228 = vst.msk [vmem:[#allocation3] sm:$0x1] (!%p516_p9), %vm227_vm0, %v710_v4  ;;  %229 = vst.msk [vmem:[#allocation4] sm:$0x1] (!%p516_p9), %vm227_vm0, %v710_v4 }
  0x36   : > { %s515_s18 = sshll.u32 %s219_s30, 3  ;;  %230 = vst.msk [vmem:[#allocation5] sm:$0x1] (!%p516_p9), %vm227_vm0, %v710_v4  ;;  %231 = vst.msk [vmem:[#allocation6] sm:$0x1] (!%p516_p9), %vm227_vm0, %v710_v4 }
  0x37   : > { %s838_s8 = scalar_lea.vmem %s913_s2, %s515_s18  ;;  %238 = vadd.xlane.f32.xlu0 (!%p516_p9), %v236_v2  ;;  %233 = vst.msk [vmem:[#allocation7] sm:$0x1] (!%p516_p9), %vm232_vm1, %v710_v4 }
  0x3b   : > { %240 = vadd.xlane.f32.xlu0 (!%p516_p9), %v237_v3 }
  0xc4   : > { %v239_v5 = vpop.xlane.xlu0 %238 }
  0xc5   : > { %v242_v6 = vmax.f32 %v239_v5, 1e-24 }
  0xc7   : > { %591 = vrsqrt.f32 %v242_v6 }
  0xc8   : > { %v241_v7 = vpop.xlane.xlu0 %240 }
  0xc9   : > { %v243_v8 = vmax.f32 %v241_v7, 1e-24 }
  0xcb   : > { %593 = vrsqrt.f32 %v243_v8 }
  0xd1   : > { %v592_v9 = vpop.eup %591 }
  0xd2   : > { %v246_v11 = vmul.f32 %v592_v9, %v234_v0 }
  0xd5   : > { %v594_v10 = vpop.eup %593 }
  0xd6   : > { %v247_v12 = vmul.f32 %v594_v10, %v235_v1 }
  0xd8   : > { %v248_v13 = vpack.c.bf16 %v247_v12, %v246_v11 }
  0xda   : > { %249 = vst [vmem:[#allocation2] sm:$0xff] %v248_v13 }
  0xdb PF: > { %v250_v14 = vld [vmem:[%s193_s9] sm:$0xff]  ;;  %v251_v15 = vld [vmem:[%s193_s9 + $0x8] sm:$0xff]  ;;  %v711_v18 = vmov 0   ;;  %v712_v20 = vmov 0.0   ;;  %vm713_vm2 = vmmov 0   ;;  %vm323_vm3 = vcmask 130048  }
  0xdc   : > { %v309_v16 = vld [vmem:[%s838_s8] sm:$0xff]  ;;  %v252_v17 = vmul.f32 %v250_v14, %v250_v14  ;;  %595 = vset.pattern.permute.xlu1 %v711_v18  ;;  %596 = vset.pattern.permute.xlu0 %v711_v18  ;;  %v253_v19 = vmul.f32 %v251_v15, %v251_v15  ;;  %v348_v31 = vld [vmem:[#allocation5] sm:$0x1]  ;;  %vm346_vm5 = vcmask 122880   ;;  %v369_v54 = vld [vmem:[#allocation6] sm:$0x1] }
  0xdd   : > { %312 = vperm.xlu1 %595, %v309_v16   ;;  %527 = vmatprep.subr.bf16.mxu0 %v712_v20  ;;  %v517_v22 = vld [vmem:[%s914_s3] ss:$0 sm:$0xff]  ;;  %v338_v7 = vld [vmem:[#allocation3] sm:$0x1]  ;;  %vm382_vm6 = vcmask 7168   ;;  %vm395_vm7 = vcmask 0  }
  0xde   : > { %254 = vadd.xlane.f32.xlu0 %v252_v17  ;;  %529 = vmatprep.mubr.msk.bf16.mxu0 %vm713_vm2, %v712_v20  ;;  %p519_p7 = scmp.ne.s32.totalorder %s759_s19, 1 }
  0xe1   : > { %v267_v21 = vld [vmem:[#allocation2] sm:$0xff] }
  0xe2   : > { %256 = vadd.xlane.f32.xlu0 %v253_v19  ;;  %528 = vmatpush3.bf16.xpose.msra.mxu0 %v267_v21 }
 0x15c   : > { %v313_v23 = vpop.permute.xlu1 %312 }
 0x15d   : > { %vm318_vm4 = vcmp.eq.s32.totalorder %v313_v23, %v517_v22 }
 0x15e   : > { %v855_v24 = vsel %vm318_vm4, 1.0, %v712_v20 }
 0x15f   : > { %v330_v25 = vsel %vm323_vm3, %v855_v24, 0.0 }
 0x160   : > { %331 = vadd.xlane.f32.xlu1 %v330_v25  ;;  %v349_v26 = vrot.slane %v330_v25, 4 }
 0x162   : > { %v350_v27 = vadd.f32 %v349_v26, %v330_v25 }
 0x164   : > { %v351_v28 = vrot.slane %v350_v27, 2 }
 0x166   : > { %v352_v29 = vadd.f32 %v351_v28, %v350_v27 }
 0x168   : > { %v353_v30 = vrot.slane %v352_v29, 1 }
 0x16a   : > { %v354_v32 = vadd.f32 %v353_v30, %v352_v29 }
 0x16b   : > { %v255_v33 = vpop.xlane.xlu0 %254 }
 0x16c   : > { %v258_v34 = vmax.f32 %v255_v33, 1e-24  ;;  %v355_v35 = vadd.f32 %v354_v32, %v348_v31  ;;  %v357_v32 = vld [vmem:[#allocation4] sm:$0x1] }
 0x16e   : > { %597 = vrsqrt.f32 %v258_v34  ;;  %356 = vst.msk [vmem:[#allocation5] sm:$0x1] %vm346_vm5, %v355_v35  ;;  %v380_v35 = vld [vmem:[#allocation7] sm:$0x1] }
 0x16f   : > { %v257_v36 = vpop.xlane.xlu0 %256 }
 0x170   : > { %v259_v37 = vmax.f32 %v257_v36, 1e-24 }
 0x172   : > { %599 = vrsqrt.f32 %v259_v37 }
 0x178   : > { %v598_v38 = vpop.eup %597 }
 0x179   : > { %v262_v39 = vmul.f32 10.0, %v598_v38  ;;  %v421_v38 = vld [vmem:[#allocation5] sm:$0x1] (!%p519_p7) }
 0x17b   : > { %v264_v42 = vmul.f32 %v262_v39, %v250_v14 }
 0x17c   : > { %v600_v40 = vpop.eup %599 }
 0x17d   : > { %v263_v41 = vmul.f32 10.0, %v600_v40 }
 0x17f   : > { %v265_v43 = vmul.f32 %v263_v41, %v251_v15 }
 0x181   : > { %v266_v44 = vpack.c.bf16 %v265_v43, %v264_v42 }
 0x183   : > { %530 = vmatmul.mubr.bf16.vlgmr.msra.gmra.mrb[0].mxu0 %v266_v44 }
 0x1ed   : > { %v332_v45 = vpop.xlane.xlu1 %331 }
 0x1ee   : > { %601 = vrcp.f32 %v332_v45 }
 0x1f8   : > { %v602_v46 = vpop.eup %601 }
 0x1f9   : > { %v370_v47 = vmul.f32 %v602_v46, %v855_v24 }
 0x1fb   : > { %v371_v48 = vsel %vm323_vm3, %v370_v47, 0.0 }
 0x1fc   : > { %v372_v49 = vrot.slane %v371_v48, 4 }
 0x1fe   : > { %v373_v50 = vadd.f32 %v372_v49, %v371_v48 }
 0x200   : > { %v374_v51 = vrot.slane %v373_v50, 2 }
 0x202   : > { %v375_v52 = vadd.f32 %v374_v51, %v373_v50 }
 0x204   : > { %v376_v53 = vrot.slane %v375_v52, 1 }
 0x206   : > { %v377_v55 = vadd.f32 %v376_v53, %v375_v52 }
 0x208   : > { %v378_v56 = vadd.f32 %v377_v55, %v369_v54 }
 0x20a   : > { %379 = vst.msk [vmem:[#allocation6] sm:$0x1] %vm346_vm5, %v378_v56 }
 0x211   : > { %v404_v42 = vld [vmem:[#allocation6] sm:$0x1] (!%p519_p7) }
 0x256   : > { %v302_v57 = vpop.f32.mrb[0].mxu0 }
 0x257   : > { %v321_v58 = vmul.f32 1.442695, %v302_v57  ;;  %v531_v59 = vpop.f32.mrb[1].mxu0 }
 0x258   : > { %v305_v60 = vpop.f32.mrb[2].mxu0 }
 0x259   : > { %603 = vpow2.f32 %v321_v58  ;;  %v329_v61 = vmul.f32 %v855_v24, %v305_v60  ;;  %v532_v62 = vpop.f32.mrb[3].mxu0 }
 0x25b   : > { %v335_v63 = vsel %vm323_vm3, %v329_v61, 0.0 }
 0x25c   : > { %336 = vadd.xlane.f32.xlu0 %v335_v63 }
 0x263   : > { %v604_v0 = vpop.eup %603 }
 0x264   : > { %v324_v1 = vsel %vm323_vm3, %v604_v0, 0.0 }
 0x265   : > { %v339_v2 = vrot.slane %v324_v1, 4 }
 0x267   : > { %v340_v3 = vadd.f32 %v339_v2, %v324_v1 }
 0x269   : > { %v341_v4 = vrot.slane %v340_v3, 2 }
 0x26b   : > { %v342_v5 = vadd.f32 %v341_v4, %v340_v3 }
 0x26d   : > { %v343_v6 = vrot.slane %v342_v5, 1 }
 0x26f   : > { %v344_v8 = vadd.f32 %v343_v6, %v342_v5 }
 0x271   : > { %v345_v9 = vadd.f32 %v344_v8, %v338_v7 }
 0x273   : > { %347 = vst.msk [vmem:[#allocation3] sm:$0x1] %vm346_vm5, %v345_v9 }
 0x2e9   : > { %v337_v10 = vpop.xlane.xlu0 %336 }
 0x2ea   : > { %v381_v11 = vmul.f32 %v602_v46, %v337_v10 }
 0x2ec   : > { %v383_v12 = vsel %vm382_vm6, %v381_v11, 0.0 }
 0x2ed   : > { %384 = vadd.xlane.f32.xlu0 %v383_v12 }
 0x2f1   : > { %325 = vadd.xlane.f32.xlu0 %v324_v1 }
 0x37a   : > { %v385_v13 = vpop.xlane.xlu0 %384 }
 0x37b   : > { %v386_v14 = vrot.slane %v385_v13, 4 }
 0x37d   : > { %v387_v15 = vadd.f32 %v386_v14, %v385_v13 }
 0x37e   : > { %v326_v16 = vpop.xlane.xlu0 %325 }
 0x37f   : > { %v388_v17 = vrot.slane %v387_v15, 2  ;;  %605 = vlog2.f32 %v326_v16 }
 0x381   : > { %v389_v18 = vadd.f32 %v388_v17, %v387_v15 }
 0x383   : > { %v390_v19 = vrot.slane %v389_v18, 1 }
 0x385   : > { %v391_v20 = vadd.f32 %v390_v19, %v389_v18 }
 0x387   : > { %533 = vpush %v391_v20 }
 0x389   : > { %v606_v21 = vpop.eup %605 }
 0x38a   : > { %v328_v22 = vmul.f32 0.6931472, %v606_v21 }
 0x38c   : > { %v358_v23 = vmul.f32 %v855_v24, %v328_v22  ;;  %v401_v24 = vld [vmem:[#allocation3] sm:$0x1] (!%p519_p7) }
 0x38d   : > { %607 = vlog2.f32 (!%p519_p7), %v401_v24 }
 0x38e   : > { %v359_v25 = vsub.f32 %v329_v61, %v358_v23  ;;  %609 = vrcp.f32 (!%p519_p7), %v421_v38 }
 0x390   : > { %v360_v26 = vsel %vm323_vm3, %v359_v25, 0.0 }
 0x391   : > { %v361_v27 = vrot.slane %v360_v26, 4 }
 0x393   : > { %v362_v28 = vadd.f32 %v361_v27, %v360_v26 }
 0x395   : > { %v363_v29 = vrot.slane %v362_v28, 2 }
 0x397   : > { %v364_v30 = vadd.f32 %v363_v29, %v362_v28  ;;  %v608_v41 = vpop.eup (!%p519_p7), %607 }
 0x398   : > { %v610_v43 = vpop.eup (!%p519_p7), %609  ;;  %v403_v44 = vmul.f32 (!%p519_p7), 0.6931472, %v608_v41 }
 0x399   : > { %v365_v31 = vrot.slane %v364_v30, 1 }
 0x39a   : > { %v405_v45 = vmul.f32 (!%p519_p7), %v404_v42, %v403_v44 }
 0x39b   : > { %v366_v33 = vadd.f32 %v365_v31, %v364_v30 }
 0x39c   : > { %v406_v47 = vsel (!%p519_p7), %vm346_vm5, %v405_v45, 0.0 }
 0x39d   : > { %v367_v34 = vadd.f32 %v366_v33, %v357_v32  ;;  %407 = vadd.xlane.f32.xlu0 (!%p519_p7), %v406_v47 }
 0x39f   : > { %368 = vst.msk [vmem:[#allocation4] sm:$0x1] %vm346_vm5, %v367_v34 }
 0x3a6   : > { %v419_v39 = vld [vmem:[#allocation4] sm:$0x1] (!%p519_p7) }
 0x3a7   : > { %v420_v40 = vsub.f32 (!%p519_p7), 0.0, %v419_v39 }
 0x3a9   : > { %v423_v46 = vmul.f32 (!%p519_p7), %v610_v43, %v420_v40 }
 0x3ab   : > { %v424_v48 = vsel (!%p519_p7), %vm346_vm5, %v423_v46, 0.0 }
 0x3ac   : > { %425 = vadd.xlane.f32.xlu0 (!%p519_p7), %v424_v48 }
 0x3b6   : > { %400 = sbr.rel (%p519_p7) target bundleno = 1150 (0x47e), region = 48 }
 0x3b8   : > { %s534_s15 = spop %533 }
 0x3b9   : > { %v393_v36 = vstv %s534_s15 }
 0x3ba   : > { %v394_v37 = vadd.f32 %v393_v36, %v380_v35 }
 0x3bc   : > { %396 = vst.msk [vmem:[#allocation7] sm:$0x1] %vm395_vm7, %v394_v37 }
 0x3c3   : > { %v417_v0 = vld [vmem:[#allocation7] sm:$0x1] }
 0x42a   : > { %v408_v49 = vpop.xlane.xlu0 %407 }
 0x42b   : > { %v409_v50 = vrot.slane %v408_v49, 4 }
 0x42d   : > { %v410_v51 = vadd.f32 %v409_v50, %v408_v49 }
 0x42f   : > { %v411_v53 = vrot.slane %v410_v51, 2 }
 0x431   : > { %v412_v56 = vadd.f32 %v411_v53, %v410_v51 }
 0x433   : > { %v413_v58 = vrot.slane %v412_v56, 1 }
 0x435   : > { %v414_v60 = vadd.f32 %v413_v58, %v412_v56 }
 0x437   : > { %535 = vpush %v414_v60 }
 0x439   : > { %v426_v52 = vpop.xlane.xlu0 %425 }
 0x43a   : > { %v427_v54 = vrot.slane %v426_v52, 4 }
 0x43c   : > { %v428_v55 = vadd.f32 %v427_v54, %v426_v52 }
 0x43e   : > { %v429_v57 = vrot.slane %v428_v55, 2 }
 0x440   : > { %v430_v59 = vadd.f32 %v429_v57, %v428_v55 }
 0x442   : > { %v431_v61 = vrot.slane %v430_v59, 1 }
 0x444   : > { %v432_v62 = vadd.f32 %v431_v61, %v430_v59 }
 0x446   : > { %537 = vpush %v432_v62 }
 0x468   : > { %s536_s21 = spop %535 }
 0x469   : > { %v416_v63 = vstv %s536_s21 }
 0x46a   : > { %v418_v1 = vsub.f32 %v416_v63, %v417_v0 }
 0x477   : > { %s538_s22 = spop %537 }
 0x478   : > { %v434_v2 = vstv %s538_s22 }
 0x479   : > { %v435_v3 = vadd.f32 %v434_v2, %v418_v1 }
 0x47b   : > { %v436_v4 = vmul.f32 0.03125, %v435_v3 }
 0x47d   : > { %437 = vst.msk [vmem:[#allocation11] sm:$0x1] %vm395_vm7, %v436_v4 }
 0x47e PF: > { %p550_p4 = scmp.eq.s32.totalorder %s759_s19, 1  ;;  %s714_s25 = smov [#allocation11]  }
 0x47f   : > { %s445_s26 = sshll.u32 %s714_s25, 4  ;;  %s446_s26 = int_to_ptr.vmem [resolvable:$true] %s445_s26 }
 0x480   : > { %s641_s27 = scalar_lea.vmem %s446_s26, 16  ;;  %s647_s28 = scalar_lea.vmem %s446_s26, 32 }
 0x481   : > { %p642_p5 = scmp.ne.s32.totalorder %s446_s26, %s641_s27  ;;  %p648_p12 = scmp.lt.s32.totalorder %s446_s26, %s446_s26 }
 0x482   : > { %p649_p0 = scmp.lt.s32.totalorder %s647_s28, %s641_s27 }
 0x483   : > { %p643_p6 = pnand %p642_p5, %p550_p4 }
 0x484   : > { %p650_p1 = por %p649_p0, %p648_p12 }
 0x485   : > { %p644_p10 = pneg %p643_p6 }
 0x487   : > { %p651_p2 = pnand %p650_p1, %p644_p10 }
 0x489   : > { %654 = shalt.err (!%p651_p2)
}
 0x48a   : > { %s655_s9 = scalar_lea.hbm %s915_s4, 16 }
 0x48b   : > { %p656_p11 = scmp.ne.s32.totalorder %s915_s4, %s655_s9  ;;  %p661_p8 = scmp.lt.u32.totalorder %s655_s9, %s915_s4 }
 0x48d   : > { %p657_p13 = pnand %p656_p11, %p550_p4 }
 0x48f   : > { %p658_p3 = pneg %p657_p13 }
 0x491   : > { %p663_p9 = pnand %p661_p8, %p658_p3 }
 0x493   : > { %666 = shalt.err (!%p663_p9)
}
 0x494   : > { %542 = dma.vmem_to_hbm [thread:$0]  (%p550_p4), %s446_s26, 16, %s915_s4, [#allocation10]  }
 0x495   : > { %688 = dma.done.wait (%p550_p4), [#allocation10], 16  }
 0x496   : > { %690 = vsyncadd (%p550_p4), [#allocation10], 4294967280 }
 0x497 PF: > { %p15_p7 = scmp.ge.s32.totalorder %s762_s20, 4   ;;  %s919_s15 = smov %s697_s16 }
 0x498   : > { %s920_s16 = smov %s701_s17  ;;  %s921_s17 = smov %s772_s23 }
 0x499   : > { %s922_s18 = smov %s762_s20  ;;  %17 = sbr.rel (!%p15_p7) target bundleno = 4 (0x4), region = 84 }
 0x4a0   :  { %458 = vsyncpa [#allocation9], 1 }
 0x4a1   :  { %460 = vsyncpa [#allocation9 + $0x1], 1 }
 0x4a2   :  { %461 = vsyncpa [#allocation10], 1 }
 0x4a3   :  { %463 = vsyncpa [#allocation10 + $0x1], 1 }

</bundles_post_ra>
